<compile_context>
chip_gen: v6e
topology: v6e:2x2x1
jax: 0.10.0
libtpu: 0.0.40
codegen_flags: <defaults>
</compile_context>

<pallas_src>
import jax
import jax.numpy as jnp
from jax import lax
from jax.experimental import pallas as pl
from jax.experimental.pallas import tpu as pltpu


def _yolo_decode_kernel(p_ref, scale_ref, gadd_ref, o_ref):
    """Decode one batch element.

    p_ref     : VMEM f32[1, nA, C, L]   raw conv output (L = nG*nG, lane-dense)
    scale_ref : VMEM f32[nA, C, 1]      per-(anchor, channel) multiplier
                                        (stride | anchor*stride | 1)
    gadd_ref  : VMEM f32[2, L]          (grid_x*stride, grid_y*stride)
    o_ref     : VMEM f32[1, nA, C, L]   decoded boxes
    """
    raw = p_ref[0]                                   # (nA, C, L)
    nA, C, L = raw.shape

    # channel index, broadcast over anchors / spatial
    ch = lax.broadcasted_iota(jnp.int32, (1, C, L), 1)
    is_wh = jnp.logical_and(ch >= 2, ch < 4)

    # sigmoid for xy/conf/prob, exp for wh; both full-block, selected by mask
    # (extra EUP pass is hidden behind the HBM-bound load/store).
    sg = jax.nn.sigmoid(raw)
    ex = jnp.exp(raw)
    base = jnp.where(is_wh, ex, sg)                  # (nA, C, L)

    # additive grid offset (already * stride); nonzero only on channels 0/1
    g = gadd_ref[...]                                # (2, L)
    gxs = g[0:1, :][None]                            # (1, 1, L)
    gys = g[1:2, :][None]                            # (1, 1, L)
    add = jnp.where(ch == 0, gxs, jnp.where(ch == 1, gys, 0.0))   # (1, C, L)

    # decoded = base * scale + add, one full-block unmasked store
    o_ref[0] = base * scale_ref[...] + add


def yolo_head_forward(p, anchors, stride, nC, training=True):
    """Mirrors Yolo_head.forward.

    p       : f32[bs, nA*(5+nC), nG, nG]   (NCHW conv output)
    anchors : f32[nA, 2]
    returns (p_perm, p_decoded)
      p_perm    : f32[bs, nG, nG, nA, 5+nC]
      p_decoded : f32[bs, nG, nG, nA, 5+nC]  (training=True)
                  f32[bs*nG*nG*nA, 5+nC]     (training=False / eval)
    """
    bs, _, nG, _ = p.shape
    nA = anchors.shape[0]
    C = 5 + nC
    L = nG * nG
    s = jnp.float32(stride)

    p32 = p.astype(jnp.float32)
    p5 = p32.reshape(bs, nA, C, nG, nG)
    # first output of forward(): pure permute (layout glue, required by spec)
    p_perm = jnp.transpose(p5, (0, 3, 4, 1, 2))

    # lane-dense view for the kernel: spatial dims flattened onto the lane axis
    p_flat = p5.reshape(bs, nA, C, L)

    # host-precomputed per-(anchor, channel) multiplicative factor:
    #   c in {0,1} -> stride ; c in {2,3} -> anchor_wh * stride ; c >= 4 -> 1
    anchors_f = anchors.astype(jnp.float32)
    scale = jnp.ones((nA, C), jnp.float32)
    scale = scale.at[:, 0:2].set(s)
    scale = scale.at[:, 2:4].set(anchors_f * s)
    scale = scale[..., None]                         # (nA, C, 1)

    # host-precomputed grid offsets * stride on the flat spatial axis
    # (flat index l = y*nG + x  =>  x = l % nG, y = l // nG)
    idx = jnp.arange(L, dtype=jnp.int32)
    gxs = (idx % nG).astype(jnp.float32) * s
    gys = (idx // nG).astype(jnp.float32) * s
    gadd = jnp.stack([gxs, gys], axis=0)             # (2, L)

    decoded_flat = pl.pallas_call(
        _yolo_decode_kernel,
        out_shape=jax.ShapeDtypeStruct((bs, nA, C, L), jnp.float32),
        grid_spec=pl.GridSpec(
            grid=(bs,),
            in_specs=[
                pl.BlockSpec((1, nA, C, L), lambda b: (b, 0, 0, 0)),
                pl.BlockSpec((nA, C, 1), lambda b: (0, 0, 0)),   # constant block
                pl.BlockSpec((2, L), lambda b: (0, 0)),          # constant block
            ],
            out_specs=pl.BlockSpec((1, nA, C, L), lambda b: (b, 0, 0, 0)),
        ),
        compiler_params=pltpu.CompilerParams(
            dimension_semantics=("parallel",)),
    )(p_flat, scale, gadd)

    # second output: back to the module's (bs, nG, nG, nA, C) layout (glue)
    decoded = decoded_flat.reshape(bs, nA, C, nG, nG)
    p_de = jnp.transpose(decoded, (0, 3, 4, 1, 2))
    if not training:
        p_de = p_de.reshape(-1, C)
    return p_perm, p_de


def _reference_decode(p5, anchors, stride):
    """Pure-JAX reference reproducing Yolo_head.__decode (training branch)."""
    bs, nA, C, nG, _ = p5.shape
    pp = jnp.transpose(p5, (0, 3, 4, 1, 2))          # (bs, nG, nG, nA, C)
    dxdy, dwdh = pp[..., 0:2], pp[..., 2:4]
    conf, prob = pp[..., 4:5], pp[..., 5:]

    x = jnp.tile(jnp.arange(nG, dtype=jnp.float32)[None, :], (nG, 1))
    y = jnp.tile(jnp.arange(nG, dtype=jnp.float32)[:, None], (1, nG))
    grid_xy = jnp.stack([x, y], axis=-1)[None, :, :, None, :]   # (1,nG,nG,1,2)

    pred_xy = (jax.nn.sigmoid(dxdy) + grid_xy) * stride
    pred_wh = jnp.exp(dwdh) * anchors * stride
    pred_conf = jax.nn.sigmoid(conf)
    pred_prob = jax.nn.sigmoid(prob)
    return jnp.concatenate([pred_xy, pred_wh, pred_conf, pred_prob], axis=-1)


if __name__ == "__main__":
    # Small, module-consistent shapes: bs=2, nA=3 (grid repeat is hard-coded to
    # 3 in the torch code), nC=3 -> 5+nC=8 channels per anchor, nG=16, stride=8.
    bs, nA, nC, nG = 2, 3, 3, 16
    C = 5 + nC
    stride = 8.0

    key = jax.random.PRNGKey(0)
    p = 0.5 * jax.random.normal(key, (bs, nA * C, nG, nG), dtype=jnp.float32)
    anchors = jnp.array([[1.25, 1.625], [2.0, 3.75], [4.125, 2.875]],
                        dtype=jnp.float32)

    p_perm, p_de = yolo_head_forward(p, anchors, stride, nC, training=True)
    jax.block_until_ready((p_perm, p_de))

    # correctness check vs. pure-JAX reference
    p5 = p.reshape(bs, nA, C, nG, nG)
    ref_perm = jnp.transpose(p5, (0, 3, 4, 1, 2))
    ref_de = _reference_decode(p5, anchors, stride)

    assert p_perm.shape == (bs, nG, nG, nA, C)
    assert p_de.shape == (bs, nG, nG, nA, C)
    assert bool(jnp.allclose(p_perm, ref_perm, atol=1e-5, rtol=1e-5))
    assert bool(jnp.allclose(p_de, ref_de, atol=1e-5, rtol=1e-5))

    # eval-path shape check (flatten branch)
    _, p_de_eval = yolo_head_forward(p, anchors, stride, nC, training=False)
    jax.block_until_ready(p_de_eval)
    assert p_de_eval.shape == (bs * nG * nG * nA, C)

    print("KERNEL_OK")
</pallas_src>

<mosaic_0001>
module attributes {stable_mosaic.version = 11 : i64} {
  func.func @_yolo_decode_kernel(%arg0: i32, %arg1: memref<1x3x8x256xf32, #tpu.memory_space<vmem>>, %arg2: memref<3x8x1xf32, #tpu.memory_space<vmem>>, %arg3: memref<2x256xf32, #tpu.memory_space<vmem>>, %arg4: memref<1x3x8x256xf32, #tpu.memory_space<vmem>>) attributes {dimension_semantics = [#tpu.dimension_semantics<parallel>], iteration_bounds = array<i64: 2>, scalar_prefetch = 0 : i64, scratch_operands = 0 : i64, tpu.core_type = #tpu.core_type<tc>, window_params = [{transform_indices = @transform_0, window_bounds = array<i64: 1, 3, 8, 256>}, {pipeline_mode = #tpu.pipeline_mode<synchronous>, transform_indices = @transform_1, window_bounds = array<i64: 3, 8, 1>}, {pipeline_mode = #tpu.pipeline_mode<synchronous>, transform_indices = @transform_2, window_bounds = array<i64: 2, 256>}, {transform_indices = @transform_3, window_bounds = array<i64: 1, 3, 8, 256>}]} {
    %c0 = arith.constant 0 : index
    %c0_0 = arith.constant 0 : index
    %c0_1 = arith.constant 0 : index
    %c0_2 = arith.constant 0 : index
    %0 = vector.load %arg1[%c0, %c0_0, %c0_1, %c0_2] : memref<1x3x8x256xf32, #tpu.memory_space<vmem>>, vector<1x3x8x256xf32>
    %1 = vector.shape_cast %0 : vector<1x3x8x256xf32> to vector<3x8x256xf32>
    %2 = tpu.iota {dimensions = array<i32: 1>} : vector<1x8x256xi32>
    %c2_i32 = arith.constant 2 : i32
    %3 = vector.broadcast %c2_i32 : i32 to vector<1x8x256xi32>
    %4 = arith.cmpi sge, %2, %3 : vector<1x8x256xi32>
    %c4_i32 = arith.constant 4 : i32
    %5 = vector.broadcast %c4_i32 : i32 to vector<1x8x256xi32>
    %6 = arith.cmpi slt, %2, %5 : vector<1x8x256xi32>
    %7 = arith.andi %4, %6 : vector<1x8x256xi1>
    %8 = arith.negf %1 : vector<3x8x256xf32>
    %9 = math.exp %8 : vector<3x8x256xf32>
    %cst = arith.constant 1.000000e+00 : f32
    %10 = vector.broadcast %cst : f32 to vector<3x8x256xf32>
    %11 = arith.addf %10, %9 : vector<3x8x256xf32>
    %12 = arith.divf %10, %11 : vector<3x8x256xf32>
    %13 = math.exp %1 : vector<3x8x256xf32>
    %14 = vector.shape_cast %7 : vector<1x8x256xi1> to vector<1x8x256xi1>
    %15 = vector.broadcast %14 : vector<1x8x256xi1> to vector<3x8x256xi1>
    %16 = arith.select %15, %13, %12 : vector<3x8x256xi1>, vector<3x8x256xf32>
    %c0_3 = arith.constant 0 : index
    %c0_4 = arith.constant 0 : index
    %17 = vector.load %arg3[%c0_3, %c0_4] : memref<2x256xf32, #tpu.memory_space<vmem>>, vector<2x256xf32>
    %18 = vector.extract_strided_slice %17 {offsets = [0, 0], sizes = [1, 256], strides = [1, 1]} : vector<2x256xf32> to vector<1x256xf32>
    %19 = vector.shape_cast %18 : vector<1x256xf32> to vector<1x1x256xf32>
    %20 = vector.extract_strided_slice %17 {offsets = [1, 0], sizes = [1, 256], strides = [1, 1]} : vector<2x256xf32> to vector<1x256xf32>
    %21 = vector.shape_cast %20 : vector<1x256xf32> to vector<1x1x256xf32>
    %c0_i32 = arith.constant 0 : i32
    %22 = vector.broadcast %c0_i32 : i32 to vector<1x8x256xi32>
    %23 = arith.cmpi eq, %2, %22 : vector<1x8x256xi32>
    %c1_i32 = arith.constant 1 : i32
    %24 = vector.broadcast %c1_i32 : i32 to vector<1x8x256xi32>
    %25 = arith.cmpi eq, %2, %24 : vector<1x8x256xi32>
    %cst_5 = arith.constant 0.000000e+00 : f32
    %26 = vector.shape_cast %21 : vector<1x1x256xf32> to vector<1x1x256xf32>
    %27 = vector.broadcast %26 : vector<1x1x256xf32> to vector<1x8x256xf32>
    %28 = vector.broadcast %cst_5 : f32 to vector<1x8x256xf32>
    %29 = arith.select %25, %27, %28 : vector<1x8x256xi1>, vector<1x8x256xf32>
    %30 = vector.shape_cast %19 : vector<1x1x256xf32> to vector<1x1x256xf32>
    %31 = vector.broadcast %30 : vector<1x1x256xf32> to vector<1x8x256xf32>
    %32 = arith.select %23, %31, %29 : vector<1x8x256xi1>, vector<1x8x256xf32>
    %c0_6 = arith.constant 0 : index
    %c0_7 = arith.constant 0 : index
    %c0_8 = arith.constant 0 : index
    %33 = vector.load %arg2[%c0_6, %c0_7, %c0_8] : memref<3x8x1xf32, #tpu.memory_space<vmem>>, vector<3x8x1xf32>
    %34 = vector.broadcast %33 : vector<3x8x1xf32> to vector<3x8x256xf32>
    %35 = arith.mulf %16, %34 : vector<3x8x256xf32>
    %36 = vector.broadcast %32 : vector<1x8x256xf32> to vector<3x8x256xf32>
    %37 = arith.addf %35, %36 : vector<3x8x256xf32>
    %c0_9 = arith.constant 0 : index
    %c0_10 = arith.constant 0 : index
    %c0_11 = arith.constant 0 : index
    %c0_12 = arith.constant 0 : index
    %38 = vector.load %arg4[%c0_9, %c0_10, %c0_11, %c0_12] : memref<1x3x8x256xf32, #tpu.memory_space<vmem>>, vector<1x3x8x256xf32>
    %39 = vector.shape_cast %38 : vector<1x3x8x256xf32> to vector<3x8x256xf32>
    %40 = vector.shape_cast %37 : vector<3x8x256xf32> to vector<1x3x8x256xf32>
    tpu.vector_store %arg4[%c0_9, %c0_10, %c0_11, %c0_12], %40 {strides = array<i32>} : memref<1x3x8x256xf32, #tpu.memory_space<vmem>>, vector<1x3x8x256xf32>,
    return
  }
  func.func @transform_0(%arg0: i32) -> (i32, i32, i32, i32) {
    %c0_i32 = arith.constant 0 : i32
    %c0_i32_0 = arith.constant 0 : i32
    %c0_i32_1 = arith.constant 0 : i32
    %c0_i32_2 = arith.constant 0 : i32
    return %arg0, %c0_i32, %c0_i32_0, %c0_i32_1 : i32, i32, i32, i32
  }
  func.func @transform_1(%arg0: i32) -> (i32, i32, i32) {
    %c0_i32 = arith.constant 0 : i32
    %c0_i32_0 = arith.constant 0 : i32
    %c0_i32_1 = arith.constant 0 : i32
    %c0_i32_2 = arith.constant 0 : i32
    return %c0_i32, %c0_i32_0, %c0_i32_1 : i32, i32, i32
  }
  func.func @transform_2(%arg0: i32) -> (i32, i32) {
    %c0_i32 = arith.constant 0 : i32
    %c0_i32_0 = arith.constant 0 : i32
    %c0_i32_1 = arith.constant 0 : i32
    return %c0_i32, %c0_i32_0 : i32, i32
  }
  func.func @transform_3(%arg0: i32) -> (i32, i32, i32, i32) {
    %c0_i32 = arith.constant 0 : i32
    %c0_i32_0 = arith.constant 0 : i32
    %c0_i32_1 = arith.constant 0 : i32
    %c0_i32_2 = arith.constant 0 : i32
    return %arg0, %c0_i32, %c0_i32_0, %c0_i32_1 : i32, i32, i32, i32
  }
}

</mosaic_0001>

<bundles_post_ra>
// kernel: tpu_custom_call.1
= control target key start
LH: loop header
LB: loop body
LE: loop exit
PB: predicated region body
PF: predicated region fallthrough
CT: control target
= control target key end

     0   :  { %8 = vsyncpa [#allocation3], 0  ;;  %s831_s0 = inlined_call_operand.hbm [shape: f32[2,3,8,256], index: 0, kind: input, shape index: {}]   ;;  %s832_s1 = inlined_call_operand.vmem [shape: f32[3,8,1], index: 1, kind: input, shape index: {}]   ;;  %s833_s2 = inlined_call_operand.vmem [shape: f32[2,256], index: 2, kind: input, shape index: {}]   ;;  %s834_s3 = inlined_call_operand.hbm [shape: f32[2,3,8,256], index: 3, kind: output, shape index: {}]  }
   0x1   :  { %10 = vsyncpa [#allocation3 + $0x1], 0 }
   0x2   :  { %11 = vsyncpa [#allocation4], 0 }
   0x3   :  { %13 = vsyncpa [#allocation4 + $0x1], 0  ;;  %s651_s12 = smov 0   ;;  %s653_s13 = smov 0  }
   0x4   :  { %s655_s14 = smov 0   ;;  %s657_s15 = smov 0  }
   0x5 LB: > { %s672_s16 = sadd.s32 4294967295, %s622_s15   ;;  %s423_s17 = sadd.s32 4294967294, %s622_s15   ;;  %s622_s15 = sphi %s657_s15, %s850_s15   ;;  %s618_s14 = sphi %s655_s14, %s849_s14   ;;  %s614_s13 = sphi %s653_s13, %s848_s13   ;;  %s610_s12 = sphi %s651_s12, %s847_s12  }
   0x6   : > { %s676_s18 = sadd.s32 1, %s622_s15   ;;  %s26_s19 = sadd.s32 1, %s618_s14 }
   0x7   : > { %s23_s20 = ssub.s32 %s622_s15, %s676_s18  ;;  %p33_p0 = scmp.ne.s32.totalorder %s618_s14, %s614_s13 }
   0x8   : > { %p24_p1 = scmp.eq.s32.totalorder %s23_s20, 0  ;;  %p34_p2 = scmp.eq.s32.totalorder %s622_s15, 0 }
   0x9   : > { %p39_p3 = scmp.ne.s32.totalorder %s614_s13, %s610_s12  ;;  %p40_p4 = scmp.eq.s32.totalorder %s672_s16, 0 }
   0xa   : > { %s688_s21 = scalar_select %p24_p1, %s618_s14, %s26_s19  }
   0xb   : > { %p35_p5 = por %p34_p2, %p33_p0  ;;  %p690_p6 = por %p40_p4, %p39_p3 }
   0xc   : > { %p105_p7 = scmp.eq.s32.totalorder %s672_s16, 1  ;;  %p111_p8 = scmp.eq.s32.totalorder %s423_s17, 1 }
   0xd   : > { %s837_s22 = scalar_select %p690_p6, 1, 0 }
   0xe   : > { %p453_p10 = scmp.lt.s32.totalorder %s622_s15, 2  ;;  %p697_p11 = por %p105_p7, %p33_p0 }
   0xf   : > { %p701_p12 = por %p111_p8, %p39_p3  ;;  %s137_s25 = sand.u32 1, %s618_s14  }
  0x10   : > { %s838_s23 = scalar_select %p697_p11, 1, 0 }
  0x11   : > { %s839_s24 = scalar_select %p701_p12, 1, 0 }
  0x12   : > { %s438_s26 = smul.u32 768, %s622_s15  ;;  %p712_p13 = pnand %p453_p10, %p35_p5 }
  0x13   : > { %s437_s27 = smul.u32 48, %s137_s25  ;;  %s718_s7 = scalar_lea.sflag [#allocation3], %s137_s25 }
  0x14   : > { %s710_s30 = scalar_lea.hbm %s831_s0, %s438_s26  ;;  %p532_p1 = pneg %p712_p13 }
  0x15   : > { %s141_s5 = scalar_lea.vmem [#allocation2], %s437_s27  ;;  %s530_s8 = scalar_lea.hbm %s710_s30, 768 }
  0x16   : > { %s148_s6 = sshll.u32 %s141_s5, 4  ;;  %p531_p0 = scmp.ne.s32.totalorder %s710_s30, %s530_s8  ;;  %s716_s6 = int_to_ptr.vmem [resolvable:$true] %s148_s6 }
  0x17   : > { %s535_s11 = scalar_lea.hbm %s831_s0, 1536  ;;  %p536_p4 = scmp.lt.s32.totalorder %s710_s30, %s831_s0 }
  0x18   : > { %p533_p2 = pnand %p532_p1, %p531_p0  ;;  %p537_p5 = scmp.lt.s32.totalorder %s535_s11, %s530_s8 }
  0x1a   : > { %p534_p3 = pneg %p533_p2  ;;  %p538_p7 = por %p537_p5, %p536_p4 }
  0x1c   : > { %p539_p8 = pnand %p538_p7, %p534_p3 }
  0x1e   : > { %542 = shalt.err (!%p539_p8)
}
  0x1f   : > { %s543_s20 = scalar_lea.vmem %s716_s6, 768  ;;  %s624_s25 = smov [#allocation2]  }
  0x20   : > { %p544_p10 = scmp.ne.s32.totalorder %s716_s6, %s543_s20  ;;  %s548_s26 = sshll.u32 %s624_s25, 4  ;;  %s549_s26 = int_to_ptr.vmem [resolvable:$false] %s548_s26 }
  0x21   : > { %s550_s27 = scalar_lea.vmem %s549_s26, 1536  ;;  %p551_p2 = scmp.lt.s32.totalorder %s716_s6, %s549_s26 }
  0x22   : > { %p546_p9 = pnand %p544_p10, %p532_p1  ;;  %p552_p12 = scmp.lt.s32.totalorder %s550_s27, %s543_s20 }
  0x24   : > { %p547_p0 = pneg %p546_p9  ;;  %p553_p11 = por %p552_p12, %p551_p2 }
  0x26   : > { %p554_p6 = pnand %p553_p11, %p547_p0 }
  0x28   : > { %557 = shalt.err (!%p554_p6)
}
  0x29   : > { %s625_s28 = smov 256   ;;  %s626_s29 = smov 16  }
  0x2a   : > { %448 = dma.hbm_to_vmem [thread:$0]  (!%p712_p13), %s710_s30, 768, %s716_s6, %s718_s7, %s625_s28, %s625_s28, %s626_s29  }
  0x2b   : > { %p427_p9 = scmp.ge.s32.totalorder %s622_s15, 1  ;;  %p156_p1 = scmp.lt.s32.totalorder %s622_s15, 3 }
  0x2d   : > { %p157_p3 = pnand %p427_p9, %p156_p1 }
  0x2e   : > { %s742_s5 = sand.u32 (!%p157_p3), 1, %s614_s13   ;;  %p841_p6 = scmp.ne.s32.totalorder (!%p157_p3), %s837_s22, 0 }
  0x2f   : > { %160 = sbr.rel (%p157_p3) target bundleno = 201 (0xc9), region = 32  ;;  %s163_s9 = scalar_lea.sflag (!%p157_p3), [#allocation3], %s742_s5 }
  0x30   : > { %s439_s8 = smul.u32 (!%p157_p3), 48, %s742_s5 }
  0x32   : > { %s166_s10 = scalar_lea.vmem (!%p157_p3), [#allocation2], %s439_s8 }
  0x34   : > { %601 = dma.done.wait (%p841_p6), %s163_s9, 768  }
  0x35   : > { %603 = vsyncadd (%p841_p6), %s163_s9, 4294966528  ;;  %v627_v0 = vmov 0   ;;  %v300_v1 = vld [vmem:[%s832_s1] sm:$0xff]  ;;  %v302_v2 = vld [vmem:[%s832_s1 + $0x10] sm:$0xff]  ;;  %v195_v26 = vlaneseq  ;;  %s188_s20 = scalar_lea.vmem [#allocation5], %s439_s8  ;;  %s440_s26 = smul.u32 768, %s672_s16 }
  0x36   : > { %492 = vset.pattern.permute.xlu0 %v627_v0  ;;  %493 = vset.pattern.permute.xlu1 %v627_v0  ;;  %v301_v3 = vld [vmem:[%s832_s1 + $0x8] sm:$0xff]  ;;  %v189_v4 = vld [vmem:[%s166_s10] sm:$0xff]  ;;  %v191_v12 = vld [vmem:[%s166_s10 + $0x10] sm:$0xff]  ;;  %s350_s25 = sshll.u32 %s188_s20, 4  ;;  %s337_s29 = scalar_lea.sflag [#allocation4], %s742_s5  ;;  %s783_s25 = int_to_ptr.vmem [resolvable:$true] %s350_s25 }
  0x37   : > { %305 = vperm.xlu0 %492, %v300_v1   ;;  %315 = vperm.xlu1 %493, %v302_v2   ;;  %v190_v5 = vld [vmem:[%s166_s10 + $0x8] sm:$0xff]  ;;  %v193_v6 = vld [vmem:[%s166_s10 + $0x20] sm:$0xff]  ;;  %v428_v7 = vmul.f32 -1.442695, %v189_v4  ;;  %v192_v13 = vld [vmem:[%s166_s10 + $0x18] sm:$0xff]  ;;  %v196_v33 = vshrl.u32 %v195_v26, 7  ;;  %s788_s28 = scalar_lea.hbm %s834_s3, %s440_s26 }
  0x38   : > { %v194_v8 = vld [vmem:[%s166_s10 + $0x28] sm:$0xff]  ;;  %v429_v9 = vmul.f32 -1.442695, %v190_v5  ;;  %v432_v10 = vmul.f32 -1.442695, %v193_v6  ;;  %s558_s8 = scalar_lea.vmem %s783_s25, 768 }
  0x39   : > { %v433_v11 = vmul.f32 -1.442695, %v194_v8  ;;  %494 = vpow2.f32 %v428_v7  ;;  %v430_v14 = vmul.f32 -1.442695, %v191_v12  ;;  %v431_v15 = vmul.f32 -1.442695, %v192_v13  ;;  %p559_p11 = scmp.ne.s32.totalorder %s783_s25, %s558_s8 }
  0x3a   : > { %496 = vpow2.f32 %v429_v9  ;;  %v236_v16 = vmul.f32 1.442695, %v189_v4  ;;  %v238_v18 = vmul.f32 1.442695, %v190_v5  ;;  %v244_v20 = vmul.f32 1.442695, %v193_v6 }
  0x3b   : > { %310 = vperm.xlu0 %492, %v301_v3   ;;  %498 = vpow2.f32 %v432_v10  ;;  %v246_v22 = vmul.f32 1.442695, %v194_v8  ;;  %v240_v31 = vmul.f32 1.442695, %v191_v12  ;;  %v242_v32 = vmul.f32 1.442695, %v192_v13 }
  0x3c   : > { %500 = vpow2.f32 %v433_v11  ;;  %v262_v36 = vsub.s32 1, %v196_v33  ;;  %v266_v37 = vsub.s32 3, %v196_v33  ;;  %v256_v38 = vld [vmem:[%s833_s2] sm:$0xf]  ;;  %v282_v40 = vsub.s32 0, %v196_v33  ;;  %p844_p12 = scmp.ne.s32.totalorder %s838_s23, 0 }
  0x3d   : > { %502 = vpow2.f32 %v430_v14  ;;  %v286_v41 = vsub.s32 2, %v196_v33  ;;  %vm197_vm0 = vcmp.ge.s32.totalorder %v196_v33, 2  ;;  %vm198_vm1 = vcmp.lt.s32.totalorder %v196_v33, 4  ;;  %s628_s9 = smov [#allocation5]  }
  0x3e   : > { %504 = vpow2.f32 %v431_v15  ;;  %v263_v43 = vrot.slane %v256_v38, %v262_v36  ;;  %v267_v44 = vrot.slane %v256_v38, %v266_v37  ;;  %v283_v48 = vrot.slane %v256_v38, %v282_v40  ;;  %vm764_vm3 = vmand %vm197_vm0, %vm198_vm1  ;;  %p560_p13 = pnand %p559_p11, %p844_p12  ;;  %s562_s10 = sshll.u32 %s628_s9, 4  ;;  %s563_s10 = int_to_ptr.vmem [resolvable:$false] %s562_s10 }
  0x3f   : > { %506 = vpow2.f32 %v236_v16  ;;  %v287_v49 = vrot.slane %v256_v38, %v286_v41  ;;  %vm258_vm2 = vcmp.eq.s32.totalorder %v196_v33, 1  ;;  %vm257_vm4 = vcmp.eq.s32.totalorder %v196_v33, 0  ;;  %s564_s30 = scalar_lea.vmem %s563_s10, 1536  ;;  %p565_p5 = scmp.lt.s32.totalorder %s783_s25, %s563_s10 }
  0x40   : > { %508 = vpow2.f32 %v238_v18  ;;  %v273_v51 = vrot.slane %v263_v43, %v262_v36  ;;  %v277_v52 = vrot.slane %v267_v44, %v262_v36  ;;  %v293_v57 = vrot.slane %v283_v48, %v282_v40  ;;  %p561_p4 = pneg %p560_p13  ;;  %p566_p7 = scmp.lt.s32.totalorder %s564_s30, %s558_s8 }
  0x41   : > { %510 = vpow2.f32 %v244_v20  ;;  %v297_v58 = vrot.slane %v287_v49, %v282_v40 }
  0x42   : > { %512 = vpow2.f32 %v246_v22  ;;  %v278_v60 = vsel %vm258_vm2, %v273_v51, 0.0  ;;  %v279_v61 = vsel %vm258_vm2, %v277_v52, 0.0  ;;  %p567_p8 = por %p566_p7, %p565_p5 }
  0x43   : > { %v298_v5 = vsel %vm257_vm4, %v293_v57, %v278_v60  ;;  %v299_v6 = vsel %vm257_vm4, %v297_v58, %v279_v61 }
  0x44   : > { %p568_p10 = pnand %p567_p8, %p561_p4 }
  0x46   : > { %v495_v17 = vpop.eup %494 }
  0x47   : > { %v497_v19 = vpop.eup %496  ;;  %v218_v24 = vadd.f32 1.0, %v495_v17 }
  0x48   : > { %v499_v21 = vpop.eup %498  ;;  %v219_v25 = vadd.f32 1.0, %v497_v19 }
  0x49   : > { %v501_v23 = vpop.eup %500  ;;  %v222_v27 = vadd.f32 1.0, %v499_v21  ;;  %514 = vrcp.f32 %v218_v24 }
  0x4a   : > { %v503_v28 = vpop.eup %502  ;;  %v223_v29 = vadd.f32 1.0, %v501_v23  ;;  %516 = vrcp.f32 %v219_v25 }
  0x4b   : > { %v505_v30 = vpop.eup %504  ;;  %518 = vrcp.f32 %v222_v27  ;;  %v220_v34 = vadd.f32 1.0, %v503_v28 }
  0x4c   : > { %520 = vrcp.f32 %v223_v29  ;;  %v221_v35 = vadd.f32 1.0, %v505_v30  ;;  %v507_v39 = vpop.eup %506 }
  0x4d   : > { %522 = vpow2.f32 %v240_v31  ;;  %v509_v42 = vpop.eup %508 }
  0x4e   : > { %524 = vpow2.f32 %v242_v32  ;;  %v511_v45 = vpop.eup %510 }
  0x4f   : > { %526 = vrcp.f32 %v220_v34  ;;  %v513_v46 = vpop.eup %512 }
  0x50   : > { %528 = vrcp.f32 %v221_v35 }
  0x56   : > { %v515_v47 = vpop.eup %514 }
  0x57   : > { %v517_v50 = vpop.eup %516  ;;  %v250_v63 = vsel %vm764_vm3, %v507_v39, %v515_v47 }
  0x58   : > { %v519_v53 = vpop.eup %518  ;;  %v251_v0 = vsel %vm764_vm3, %v509_v42, %v517_v50 }
  0x59   : > { %v521_v54 = vpop.eup %520  ;;  %v254_v1 = vsel %vm764_vm3, %v511_v45, %v519_v53 }
  0x5a   : > { %v523_v56 = vpop.eup %522  ;;  %v255_v2 = vsel %vm764_vm3, %v513_v46, %v521_v54 }
  0x5b   : > { %v525_v59 = vpop.eup %524 }
  0x5c   : > { %v527_v62 = vpop.eup %526 }
  0x5d   : > { %v529_v3 = vpop.eup %528  ;;  %v252_v12 = vsel %vm764_vm3, %v523_v56, %v527_v62 }
  0x5e   : > { %v253_v13 = vsel %vm764_vm3, %v525_v59, %v529_v3 }
  0xb2   : > { %v306_v4 = vpop.permute.xlu0 %305  ;;  %v316_v7 = vpop.permute.xlu1 %315 }
  0xb3   : > { %v318_v8 = vmul.f32 %v306_v4, %v250_v63  ;;  %v319_v9 = vmul.f32 %v306_v4, %v251_v0  ;;  %v322_v10 = vmul.f32 %v316_v7, %v254_v1  ;;  %v323_v11 = vmul.f32 %v316_v7, %v255_v2 }
  0xb5   : > { %v324_v14 = vadd.f32 %v318_v8, %v298_v5  ;;  %v325_v15 = vadd.f32 %v319_v9, %v299_v6  ;;  %v328_v16 = vadd.f32 %v322_v10, %v298_v5  ;;  %v329_v17 = vadd.f32 %v323_v11, %v299_v6 }
  0xb6   : > { %v311_v18 = vpop.permute.xlu0 %310 }
  0xb7   : > { %330 = vst [vmem:[%s188_s20] sm:$0xff] %v324_v14  ;;  %331 = vst [vmem:[%s188_s20 + $0x8] sm:$0xff] %v325_v15  ;;  %v320_v19 = vmul.f32 %v311_v18, %v252_v12  ;;  %v321_v20 = vmul.f32 %v311_v18, %v253_v13 }
  0xb8   : > { %334 = vst [vmem:[%s188_s20 + $0x20] sm:$0xff] %v328_v16  ;;  %335 = vst [vmem:[%s188_s20 + $0x28] sm:$0xff] %v329_v17 }
  0xb9   : > { %v326_v21 = vadd.f32 %v320_v19, %v298_v5  ;;  %v327_v22 = vadd.f32 %v321_v20, %v299_v6 }
  0xbb   : > { %332 = vst [vmem:[%s188_s20 + $0x10] sm:$0xff] %v326_v21  ;;  %333 = vst [vmem:[%s188_s20 + $0x18] sm:$0xff] %v327_v22 }
  0xbc   : > { %571 = shalt.err (!%p568_p10)
}
  0xbd   : > { %s572_s4 = scalar_lea.hbm %s788_s28, 768  ;;  %s576_s11 = scalar_lea.hbm %s834_s3, 1536 }
  0xbe   : > { %p573_p0 = scmp.ne.s32.totalorder %s788_s28, %s572_s4  ;;  %p577_p1 = scmp.lt.s32.totalorder %s788_s28, %s834_s3 }
  0xbf   : > { %p578_p3 = scmp.lt.s32.totalorder %s576_s11, %s572_s4 }
  0xc0   : > { %p574_p2 = pnand %p573_p0, %p844_p12 }
  0xc1   : > { %p579_p6 = por %p578_p3, %p577_p1 }
  0xc2   : > { %p575_p9 = pneg %p574_p2 }
  0xc4   : > { %p580_p11 = pnand %p579_p6, %p575_p9 }
  0xc6   : > { %583 = shalt.err (!%p580_p11)
}
  0xc7   : > { %s629_s19 = smov 256   ;;  %s630_s20 = smov 16  }
  0xc8   : > { %443 = dma.vmem_to_hbm [thread:$0]  (%p844_p12), %s783_s25, 768, %s788_s28, %s337_s29, %s629_s19, %s629_s19, %s630_s20  }
  0xc9 PF: > { %s365_s26 = sand.u32 1, %s610_s12   ;;  %p845_p13 = scmp.ne.s32.totalorder %s839_s24, 0 }
  0xca   : > { %p846_p4 = scmp.ge.s32.totalorder %s622_s15, 2  ;;  %s366_s27 = scalar_lea.sflag [#allocation4], %s365_s26 }
  0xcc   : > { %p450_p5 = pnand %p846_p4, %p845_p13 }
  0xce   : > { %p451_p7 = pneg %p450_p5 }
  0xd0   : > { %605 = dma.done.wait (%p451_p7), %s366_s27, 768  }
  0xd1   : > { %607 = vsyncadd (%p451_p7), %s366_s27, 4294966528  ;;  %p16_p8 = scmp.ge.s32.totalorder %s676_s18, 4   ;;  %s847_s12 = smov %s614_s13 }
  0xd2   : > { %s848_s13 = smov %s618_s14  ;;  %s849_s14 = smov %s688_s21 }
  0xd3   : > { %s850_s15 = smov %s676_s18  ;;  %18 = sbr.rel (!%p16_p8) target bundleno = 5 (0x5), region = 77 }
  0xd8   :  { %371 = vsyncpa [#allocation3], 1 }
  0xd9   :  { %373 = vsyncpa [#allocation3 + $0x1], 1 }
  0xda   :  { %374 = vsyncpa [#allocation4], 1 }
  0xdb   :  { %376 = vsyncpa [#allocation4 + $0x1], 1 }

</bundles_post_ra>
